<compile_context>
chip_gen: v5e
topology: v5e:2x2
jax: 0.10.0
libtpu: 0.0.40
codegen_flags: <defaults>
</compile_context>

<pallas_src>
import functools
import math

import jax
import jax.numpy as jnp
from jax.experimental import pallas as pl
from jax.experimental.pallas import tpu as pltpu


# ----------------------------------------------------------------------------- kernel helpers
def _layer_norm_f32(y, gamma, beta, eps, dim):
    """PyTorch hand-rolled LN: unbiased std (dim-1), eps added to std. y is f32 (rows, dim)."""
    mean = jnp.mean(y, axis=-1, keepdims=True)
    c = y - mean
    var = jnp.sum(c * c, axis=-1, keepdims=True) * (1.0 / (dim - 1))
    inv = 1.0 / (jnp.sqrt(var) + eps)          # exact: approx reciprocal failed the 1e-3 check
    return gamma * (c * inv) + beta


# ----------------------------------------------------------------------------- fused kernel
def encode_block_kernel(x_ref, wqkv_ref, bqkv_ref, wo_ref, bo_ref,
                        g1_ref, b1_ref, w1_ref, bf1_ref, w2_ref, bf2_ref,
                        g2_ref, b2_ref, o_ref, *, head_n, eps):
    BB, S, D = x_ref.shape
    Dh = D // head_n
    R = BB * S

    x = x_ref[...]                              # (BB,S,D) in the input dtype (no upcast for MXU)
    x2 = x.reshape(R, D)

    # --- fused QKV projection: one (R,D)@(D,3D) matmul; 1/sqrt(Dh) already folded into Wq/bq.
    qkv = jnp.dot(x2, wqkv_ref[...], preferred_element_type=jnp.float32)
    qkv = qkv + bqkv_ref[...].astype(jnp.float32)
    q = qkv[:, 0 * D:1 * D].reshape(BB, S, D)
    k = qkv[:, 1 * D:2 * D].reshape(BB, S, D)
    v = qkv[:, 2 * D:3 * D].reshape(BB, S, D)

    # --- per-head attention (static trace-time loop), exact softmax in f32.
    ctx_parts = []
    for h in range(head_n):
        sl = slice(h * Dh, (h + 1) * Dh)
        qh, kh, vh = q[..., sl], k[..., sl], v[..., sl]           # (BB,S,Dh)
        s = jnp.einsum('bqd,bkd->bqk', qh, kh,
                       preferred_element_type=jnp.float32)       # (BB,S,S)
        s = s - jnp.max(s, axis=-1, keepdims=True)
        e = jnp.exp(s)
        p = e * (1.0 / jnp.sum(e, axis=-1, keepdims=True))
        ctx_parts.append(jnp.einsum('bqk,bkd->bqd', p, vh,
                                    preferred_element_type=jnp.float32))
    ctx = jnp.concatenate(ctx_parts, axis=-1).reshape(R, D)       # (R,D) f32

    # --- single output projection (K = D -> full MXU fill), then LN1 + residual.
    attn = jnp.dot(ctx.astype(x.dtype), wo_ref[...],
                   preferred_element_type=jnp.float32) + bo_ref[...].astype(jnp.float32)
    x1 = x2.astype(jnp.float32) + _layer_norm_f32(
        attn, g1_ref[...].astype(jnp.float32), b1_ref[...].astype(jnp.float32), eps, D)

    # --- FFN (Linear -> ReLU -> Linear), LN2 + residual, fused in the same kernel.
    h1 = jnp.dot(x1.astype(x.dtype), w1_ref[...], preferred_element_type=jnp.float32)
    h1 = jnp.maximum(h1 + bf1_ref[...].astype(jnp.float32), 0.0)
    y = jnp.dot(h1.astype(x.dtype), w2_ref[...], preferred_element_type=jnp.float32)
    y = y + bf2_ref[...].astype(jnp.float32)
    out = x1 + _layer_norm_f32(
        y, g2_ref[...].astype(jnp.float32), b2_ref[...].astype(jnp.float32), eps, D)

    o_ref[...] = out.reshape(BB, S, D).astype(o_ref.dtype)


# ----------------------------------------------------------------------------- wrapper
_VMEM = pl.BlockSpec(memory_space=pltpu.MemorySpace.VMEM)   # whole array resident in VMEM


def _largest_divisor_leq(n, limit):
    best = 1
    for d in range(1, n + 1):
        if n % d == 0 and d <= limit:
            best = d
    return best


def encode_block_forward(x, P, *, head_n, eps=1e-6, target_rows=512):
    """x: (B, S, D). Weights are (in, out) = PyTorch Linear weight transposed."""
    B, S, D = x.shape
    assert D % head_n == 0
    Dh = D // head_n
    scale = 1.0 / math.sqrt(Dh)

    # Fold the attention scale into Wq/bq and fuse Q/K/V weights into one (D, 3D) matrix.
    wqkv = jnp.concatenate([P["wq"] * scale, P["wk"], P["wv"]], axis=1)
    bqkv = jnp.concatenate([P["bq"] * scale, P["bk"], P["bv"]])

    # Block several batches per grid step so each step processes >= ~target_rows rows.
    bb = _largest_divisor_leq(B, max(1, target_rows // max(S, 1)))
    grid = (B // bb,)

    r = lambda v: v.reshape(1, -1)
    args = (x, wqkv, r(bqkv), P["wo"], r(P["bo"]), r(P["ln1_a"]), r(P["ln1_b"]),
            P["w1"], r(P["b1"]), P["w2"], r(P["b2"]), r(P["ln2_a"]), r(P["ln2_b"]))

    # Scoped-VMEM budget: resident weights + double-buffered I/O blocks + f32 intermediates.
    d_ff = P["w1"].shape[1]
    weight_bytes = sum(int(a.size) * a.dtype.itemsize for a in args[1:])
    io_bytes = 2 * 2 * bb * S * D * x.dtype.itemsize
    interm_bytes = 4 * bb * S * (3 * D + head_n * S + d_ff + 4 * D)
    vmem_limit = int(min(max(2 * weight_bytes + io_bytes + 2 * interm_bytes + (4 << 20),
                             16 << 20), 64 << 20))

    kernel = functools.partial(encode_block_kernel, head_n=head_n, eps=eps)
    return pl.pallas_call(
        kernel,
        out_shape=jax.ShapeDtypeStruct((B, S, D), x.dtype),
        grid=grid,
        in_specs=[pl.BlockSpec((bb, S, D), lambda i: (i, 0, 0))] + [_VMEM] * 12,
        out_specs=pl.BlockSpec((bb, S, D), lambda i: (i, 0, 0)),
        compiler_params=pltpu.CompilerParams(
            dimension_semantics=("parallel",),
            vmem_limit_bytes=vmem_limit),
    )(*args)


# ----------------------------------------------------------------------------- pure-JAX reference
def _layernorm_ref(y, a, b, eps):
    mean = jnp.mean(y, axis=-1, keepdims=True)
    c = y - mean
    var = jnp.sum(c * c, axis=-1, keepdims=True) / (y.shape[-1] - 1)
    return a * c / (jnp.sqrt(var) + eps) + b


def encode_block_ref(x, P, *, head_n, eps=1e-6):
    B, S, D = x.shape
    Dh = D // head_n
    q = x @ P["wq"] + P["bq"]
    k = x @ P["wk"] + P["bk"]
    v = x @ P["wv"] + P["bv"]
    split = lambda t: t.reshape(B, S, head_n, Dh).transpose(0, 2, 1, 3)
    qh, kh, vh = split(q), split(k), split(v)
    s = jnp.einsum("bhqd,bhkd->bhqk", qh, kh) / math.sqrt(Dh)
    p = jax.nn.softmax(s, axis=-1)
    ctx = jnp.einsum("bhqk,bhkd->bhqd", p, vh).transpose(0, 2, 1, 3).reshape(B, S, D)
    attn_out = ctx @ P["wo"] + P["bo"]
    x1 = x + _layernorm_ref(attn_out, P["ln1_a"], P["ln1_b"], eps)
    h = jnp.maximum(x1 @ P["w1"] + P["b1"], 0.0)
    y = h @ P["w2"] + P["b2"]
    return x1 + _layernorm_ref(y, P["ln2_a"], P["ln2_b"], eps)


# ----------------------------------------------------------------------------- main
if __name__ == "__main__":
    B, S, D, H, D_FF = 2, 8, 32, 4, 64
    EPS = 1e-6

    key = jax.random.PRNGKey(0)
    keys = jax.random.split(key, 16)
    w = lambda k, shape: jax.random.normal(k, shape, jnp.float32) * 0.1

    # Weights stored in (in, out) layout (== PyTorch Linear weight, transposed).
    P = dict(
        wq=w(keys[0], (D, D)), bq=w(keys[1], (D,)),
        wk=w(keys[2], (D, D)), bk=w(keys[3], (D,)),
        wv=w(keys[4], (D, D)), bv=w(keys[5], (D,)),
        wo=w(keys[6], (D, D)), bo=w(keys[7], (D,)),
        ln1_a=jnp.ones((D,), jnp.float32), ln1_b=jnp.zeros((D,), jnp.float32),
        w1=w(keys[8], (D, D_FF)), b1=w(keys[9], (D_FF,)),
        w2=w(keys[10], (D_FF, D)), b2=w(keys[11], (D,)),
        ln2_a=jnp.ones((D,), jnp.float32), ln2_b=jnp.zeros((D,), jnp.float32),
    )
    x = jax.random.normal(keys[12], (B, S, D), jnp.float32)

    out = encode_block_forward(x, P, head_n=H, eps=EPS)
    out = jax.block_until_ready(out)

    ref = encode_block_ref(x, P, head_n=H, eps=EPS)
    assert out.shape == ref.shape
    max_err = float(jnp.max(jnp.abs(out - ref)))
    assert jnp.allclose(out, ref, atol=1e-3, rtol=1e-3), (
        f"mismatch vs reference, max abs err = {max_err}")

    print("KERNEL_OK")
</pallas_src>

<mosaic_0001>
module attributes {stable_mosaic.version = 11 : i64} {
  func.func @encode_block_kernel(%arg0: i32, %arg1: memref<2x8x32xf32, #tpu.memory_space<vmem>>, %arg2: memref<32x96xf32, #tpu.memory_space<vmem>>, %arg3: memref<1x96xf32, #tpu.memory_space<vmem>>, %arg4: memref<32x32xf32, #tpu.memory_space<vmem>>, %arg5: memref<1x32xf32, #tpu.memory_space<vmem>>, %arg6: memref<1x32xf32, #tpu.memory_space<vmem>>, %arg7: memref<1x32xf32, #tpu.memory_space<vmem>>, %arg8: memref<32x64xf32, #tpu.memory_space<vmem>>, %arg9: memref<1x64xf32, #tpu.memory_space<vmem>>, %arg10: memref<64x32xf32, #tpu.memory_space<vmem>>, %arg11: memref<1x32xf32, #tpu.memory_space<vmem>>, %arg12: memref<1x32xf32, #tpu.memory_space<vmem>>, %arg13: memref<1x32xf32, #tpu.memory_space<vmem>>, %arg14: memref<2x8x32xf32, #tpu.memory_space<vmem>>) attributes {dimension_semantics = [#tpu.dimension_semantics<parallel>], iteration_bounds = array<i64: 1>, scalar_prefetch = 0 : i64, scratch_operands = 0 : i64, tpu.core_type = #tpu.core_type<tc>, window_params = [{transform_indices = @transform_0, window_bounds = array<i64: 2, 8, 32>}, {pipeline_mode = #tpu.pipeline_mode<synchronous>, transform_indices = @transform_1, window_bounds = array<i64: 32, 96>}, {pipeline_mode = #tpu.pipeline_mode<synchronous>, transform_indices = @transform_2, window_bounds = array<i64: 1, 96>}, {pipeline_mode = #tpu.pipeline_mode<synchronous>, transform_indices = @transform_3, window_bounds = array<i64: 32, 32>}, {pipeline_mode = #tpu.pipeline_mode<synchronous>, transform_indices = @transform_4, window_bounds = array<i64: 1, 32>}, {pipeline_mode = #tpu.pipeline_mode<synchronous>, transform_indices = @transform_5, window_bounds = array<i64: 1, 32>}, {pipeline_mode = #tpu.pipeline_mode<synchronous>, transform_indices = @transform_6, window_bounds = array<i64: 1, 32>}, {pipeline_mode = #tpu.pipeline_mode<synchronous>, transform_indices = @transform_7, window_bounds = array<i64: 32, 64>}, {pipeline_mode = #tpu.pipeline_mode<synchronous>, transform_indices = @transform_8, window_bounds = array<i64: 1, 64>}, {pipeline_mode = #tpu.pipeline_mode<synchronous>, transform_indices = @transform_9, window_bounds = array<i64: 64, 32>}, {pipeline_mode = #tpu.pipeline_mode<synchronous>, transform_indices = @transform_10, window_bounds = array<i64: 1, 32>}, {pipeline_mode = #tpu.pipeline_mode<synchronous>, transform_indices = @transform_11, window_bounds = array<i64: 1, 32>}, {pipeline_mode = #tpu.pipeline_mode<synchronous>, transform_indices = @transform_12, window_bounds = array<i64: 1, 32>}, {transform_indices = @transform_13, window_bounds = array<i64: 2, 8, 32>}]} {
    %c0 = arith.constant 0 : index
    %c0_0 = arith.constant 0 : index
    %c0_1 = arith.constant 0 : index
    %0 = vector.load %arg1[%c0, %c0_0, %c0_1] : memref<2x8x32xf32, #tpu.memory_space<vmem>>, vector<2x8x32xf32>
    %1 = vector.shape_cast %0 : vector<2x8x32xf32> to vector<16x32xf32>
    %c0_2 = arith.constant 0 : index
    %c0_3 = arith.constant 0 : index
    %2 = vector.load %arg2[%c0_2, %c0_3] : memref<32x96xf32, #tpu.memory_space<vmem>>, vector<32x96xf32>
    %cst = arith.constant dense<0.000000e+00> : vector<16x96xf32>
    %3 = tpu.matmul %1, %2, %cst {dimension_numbers = #tpu.dot_dimension_numbers<[1], [0], [0], [1], [0, 0, 1, 1], [], []>} : vector<16x32xf32>, vector<32x96xf32>, vector<16x96xf32> -> vector<16x96xf32>
    %c0_4 = arith.constant 0 : index
    %c0_5 = arith.constant 0 : index
    %4 = vector.load %arg3[%c0_4, %c0_5] : memref<1x96xf32, #tpu.memory_space<vmem>>, vector<1x96xf32>
    %5 = vector.broadcast %4 : vector<1x96xf32> to vector<16x96xf32>
    %6 = arith.addf %3, %5 : vector<16x96xf32>
    %7 = vector.extract_strided_slice %6 {offsets = [0, 0], sizes = [16, 32], strides = [1, 1]} : vector<16x96xf32> to vector<16x32xf32>
    %8 = vector.shape_cast %7 : vector<16x32xf32> to vector<2x8x32xf32>
    %9 = vector.extract_strided_slice %6 {offsets = [0, 32], sizes = [16, 32], strides = [1, 1]} : vector<16x96xf32> to vector<16x32xf32>
    %10 = vector.shape_cast %9 : vector<16x32xf32> to vector<2x8x32xf32>
    %11 = vector.extract_strided_slice %6 {offsets = [0, 64], sizes = [16, 32], strides = [1, 1]} : vector<16x96xf32> to vector<16x32xf32>
    %12 = vector.shape_cast %11 : vector<16x32xf32> to vector<2x8x32xf32>
    %13 = vector.extract_strided_slice %8 {offsets = [0, 0, 0], sizes = [2, 8, 8], strides = [1, 1, 1]} : vector<2x8x32xf32> to vector<2x8x8xf32>
    %14 = vector.extract_strided_slice %10 {offsets = [0, 0, 0], sizes = [2, 8, 8], strides = [1, 1, 1]} : vector<2x8x32xf32> to vector<2x8x8xf32>
    %15 = vector.extract_strided_slice %12 {offsets = [0, 0, 0], sizes = [2, 8, 8], strides = [1, 1, 1]} : vector<2x8x32xf32> to vector<2x8x8xf32>
    "tpu.trace_start"() <{level = 10 : i32, message = "bqd,bkd->bqk"}> : () -> ()
    %cst_6 = arith.constant dense<0.000000e+00> : vector<2x8x8xf32>
    %16 = tpu.matmul %13, %14, %cst_6 {dimension_numbers = #tpu.dot_dimension_numbers<[2], [2], [1], [1], [0, 0, 0, 1, 1, 1], [0], [0]>} : vector<2x8x8xf32>, vector<2x8x8xf32>, vector<2x8x8xf32> -> vector<2x8x8xf32>
    "tpu.trace_stop"() : () -> ()
    %cst_7 = arith.constant dense<0xFF800000> : vector<2x8xf32>
    %17 = vector.multi_reduction <maximumf>, %16, %cst_7 [2] : vector<2x8x8xf32> to vector<2x8xf32>
    %18 = vector.shape_cast %17 : vector<2x8xf32> to vector<2x8x1xf32>
    %19 = vector.broadcast %18 : vector<2x8x1xf32> to vector<2x8x8xf32>
    %20 = arith.subf %16, %19 : vector<2x8x8xf32>
    %21 = math.exp %20 : vector<2x8x8xf32>
    %cst_8 = arith.constant dense<0.000000e+00> : vector<2x8xf32>
    %22 = vector.multi_reduction <add>, %21, %cst_8 [2] : vector<2x8x8xf32> to vector<2x8xf32>
    %23 = vector.shape_cast %22 : vector<2x8xf32> to vector<2x8x1xf32>
    %cst_9 = arith.constant 1.000000e+00 : f32
    %24 = vector.broadcast %cst_9 : f32 to vector<2x8x1xf32>
    %25 = arith.divf %24, %23 : vector<2x8x1xf32>
    %26 = vector.broadcast %25 : vector<2x8x1xf32> to vector<2x8x8xf32>
    %27 = arith.mulf %21, %26 : vector<2x8x8xf32>
    "tpu.trace_start"() <{level = 10 : i32, message = "bqk,bkd->bqd"}> : () -> ()
    %cst_10 = arith.constant dense<0.000000e+00> : vector<2x8x8xf32>
    %28 = tpu.matmul %27, %15, %cst_10 {dimension_numbers = #tpu.dot_dimension_numbers<[2], [1], [1], [2], [0, 0, 0, 1, 1, 2], [0], [0]>} : vector<2x8x8xf32>, vector<2x8x8xf32>, vector<2x8x8xf32> -> vector<2x8x8xf32>
    "tpu.trace_stop"() : () -> ()
    %29 = vector.extract_strided_slice %8 {offsets = [0, 0, 8], sizes = [2, 8, 8], strides = [1, 1, 1]} : vector<2x8x32xf32> to vector<2x8x8xf32>
    %30 = vector.extract_strided_slice %10 {offsets = [0, 0, 8], sizes = [2, 8, 8], strides = [1, 1, 1]} : vector<2x8x32xf32> to vector<2x8x8xf32>
    %31 = vector.extract_strided_slice %12 {offsets = [0, 0, 8], sizes = [2, 8, 8], strides = [1, 1, 1]} : vector<2x8x32xf32> to vector<2x8x8xf32>
    "tpu.trace_start"() <{level = 10 : i32, message = "bqd,bkd->bqk"}> : () -> ()
    %cst_11 = arith.constant dense<0.000000e+00> : vector<2x8x8xf32>
    %32 = tpu.matmul %29, %30, %cst_11 {dimension_numbers = #tpu.dot_dimension_numbers<[2], [2], [1], [1], [0, 0, 0, 1, 1, 1], [0], [0]>} : vector<2x8x8xf32>, vector<2x8x8xf32>, vector<2x8x8xf32> -> vector<2x8x8xf32>
    "tpu.trace_stop"() : () -> ()
    %cst_12 = arith.constant dense<0xFF800000> : vector<2x8xf32>
    %33 = vector.multi_reduction <maximumf>, %32, %cst_12 [2] : vector<2x8x8xf32> to vector<2x8xf32>
    %34 = vector.shape_cast %33 : vector<2x8xf32> to vector<2x8x1xf32>
    %35 = vector.broadcast %34 : vector<2x8x1xf32> to vector<2x8x8xf32>
    %36 = arith.subf %32, %35 : vector<2x8x8xf32>
    %37 = math.exp %36 : vector<2x8x8xf32>
    %cst_13 = arith.constant dense<0.000000e+00> : vector<2x8xf32>
    %38 = vector.multi_reduction <add>, %37, %cst_13 [2] : vector<2x8x8xf32> to vector<2x8xf32>
    %39 = vector.shape_cast %38 : vector<2x8xf32> to vector<2x8x1xf32>
    %cst_14 = arith.constant 1.000000e+00 : f32
    %40 = vector.broadcast %cst_14 : f32 to vector<2x8x1xf32>
    %41 = arith.divf %40, %39 : vector<2x8x1xf32>
    %42 = vector.broadcast %41 : vector<2x8x1xf32> to vector<2x8x8xf32>
    %43 = arith.mulf %37, %42 : vector<2x8x8xf32>
    "tpu.trace_start"() <{level = 10 : i32, message = "bqk,bkd->bqd"}> : () -> ()
    %cst_15 = arith.constant dense<0.000000e+00> : vector<2x8x8xf32>
    %44 = tpu.matmul %43, %31, %cst_15 {dimension_numbers = #tpu.dot_dimension_numbers<[2], [1], [1], [2], [0, 0, 0, 1, 1, 2], [0], [0]>} : vector<2x8x8xf32>, vector<2x8x8xf32>, vector<2x8x8xf32> -> vector<2x8x8xf32>
    "tpu.trace_stop"() : () -> ()
    %45 = vector.extract_strided_slice %8 {offsets = [0, 0, 16], sizes = [2, 8, 8], strides = [1, 1, 1]} : vector<2x8x32xf32> to vector<2x8x8xf32>
    %46 = vector.extract_strided_slice %10 {offsets = [0, 0, 16], sizes = [2, 8, 8], strides = [1, 1, 1]} : vector<2x8x32xf32> to vector<2x8x8xf32>
    %47 = vector.extract_strided_slice %12 {offsets = [0, 0, 16], sizes = [2, 8, 8], strides = [1, 1, 1]} : vector<2x8x32xf32> to vector<2x8x8xf32>
    "tpu.trace_start"() <{level = 10 : i32, message = "bqd,bkd->bqk"}> : () -> ()
    %cst_16 = arith.constant dense<0.000000e+00> : vector<2x8x8xf32>
    %48 = tpu.matmul %45, %46, %cst_16 {dimension_numbers = #tpu.dot_dimension_numbers<[2], [2], [1], [1], [0, 0, 0, 1, 1, 1], [0], [0]>} : vector<2x8x8xf32>, vector<2x8x8xf32>, vector<2x8x8xf32> -> vector<2x8x8xf32>
    "tpu.trace_stop"() : () -> ()
    %cst_17 = arith.constant dense<0xFF800000> : vector<2x8xf32>
    %49 = vector.multi_reduction <maximumf>, %48, %cst_17 [2] : vector<2x8x8xf32> to vector<2x8xf32>
    %50 = vector.shape_cast %49 : vector<2x8xf32> to vector<2x8x1xf32>
    %51 = vector.broadcast %50 : vector<2x8x1xf32> to vector<2x8x8xf32>
    %52 = arith.subf %48, %51 : vector<2x8x8xf32>
    %53 = math.exp %52 : vector<2x8x8xf32>
    %cst_18 = arith.constant dense<0.000000e+00> : vector<2x8xf32>
    %54 = vector.multi_reduction <add>, %53, %cst_18 [2] : vector<2x8x8xf32> to vector<2x8xf32>
    %55 = vector.shape_cast %54 : vector<2x8xf32> to vector<2x8x1xf32>
    %cst_19 = arith.constant 1.000000e+00 : f32
    %56 = vector.broadcast %cst_19 : f32 to vector<2x8x1xf32>
    %57 = arith.divf %56, %55 : vector<2x8x1xf32>
    %58 = vector.broadcast %57 : vector<2x8x1xf32> to vector<2x8x8xf32>
    %59 = arith.mulf %53, %58 : vector<2x8x8xf32>
    "tpu.trace_start"() <{level = 10 : i32, message = "bqk,bkd->bqd"}> : () -> ()
    %cst_20 = arith.constant dense<0.000000e+00> : vector<2x8x8xf32>
    %60 = tpu.matmul %59, %47, %cst_20 {dimension_numbers = #tpu.dot_dimension_numbers<[2], [1], [1], [2], [0, 0, 0, 1, 1, 2], [0], [0]>} : vector<2x8x8xf32>, vector<2x8x8xf32>, vector<2x8x8xf32> -> vector<2x8x8xf32>
    "tpu.trace_stop"() : () -> ()
    %61 = vector.extract_strided_slice %8 {offsets = [0, 0, 24], sizes = [2, 8, 8], strides = [1, 1, 1]} : vector<2x8x32xf32> to vector<2x8x8xf32>
    %62 = vector.extract_strided_slice %10 {offsets = [0, 0, 24], sizes = [2, 8, 8], strides = [1, 1, 1]} : vector<2x8x32xf32> to vector<2x8x8xf32>
    %63 = vector.extract_strided_slice %12 {offsets = [0, 0, 24], sizes = [2, 8, 8], strides = [1, 1, 1]} : vector<2x8x32xf32> to vector<2x8x8xf32>
    "tpu.trace_start"() <{level = 10 : i32, message = "bqd,bkd->bqk"}> : () -> ()
    %cst_21 = arith.constant dense<0.000000e+00> : vector<2x8x8xf32>
    %64 = tpu.matmul %61, %62, %cst_21 {dimension_numbers = #tpu.dot_dimension_numbers<[2], [2], [1], [1], [0, 0, 0, 1, 1, 1], [0], [0]>} : vector<2x8x8xf32>, vector<2x8x8xf32>, vector<2x8x8xf32> -> vector<2x8x8xf32>
    "tpu.trace_stop"() : () -> ()
    %cst_22 = arith.constant dense<0xFF800000> : vector<2x8xf32>
    %65 = vector.multi_reduction <maximumf>, %64, %cst_22 [2] : vector<2x8x8xf32> to vector<2x8xf32>
    %66 = vector.shape_cast %65 : vector<2x8xf32> to vector<2x8x1xf32>
    %67 = vector.broadcast %66 : vector<2x8x1xf32> to vector<2x8x8xf32>
    %68 = arith.subf %64, %67 : vector<2x8x8xf32>
    %69 = math.exp %68 : vector<2x8x8xf32>
    %cst_23 = arith.constant dense<0.000000e+00> : vector<2x8xf32>
    %70 = vector.multi_reduction <add>, %69, %cst_23 [2] : vector<2x8x8xf32> to vector<2x8xf32>
    %71 = vector.shape_cast %70 : vector<2x8xf32> to vector<2x8x1xf32>
    %cst_24 = arith.constant 1.000000e+00 : f32
    %72 = vector.broadcast %cst_24 : f32 to vector<2x8x1xf32>
    %73 = arith.divf %72, %71 : vector<2x8x1xf32>
    %74 = vector.broadcast %73 : vector<2x8x1xf32> to vector<2x8x8xf32>
    %75 = arith.mulf %69, %74 : vector<2x8x8xf32>
    "tpu.trace_start"() <{level = 10 : i32, message = "bqk,bkd->bqd"}> : () -> ()
    %cst_25 = arith.constant dense<0.000000e+00> : vector<2x8x8xf32>
    %76 = tpu.matmul %75, %63, %cst_25 {dimension_numbers = #tpu.dot_dimension_numbers<[2], [1], [1], [2], [0, 0, 0, 1, 1, 2], [0], [0]>} : vector<2x8x8xf32>, vector<2x8x8xf32>, vector<2x8x8xf32> -> vector<2x8x8xf32>
    "tpu.trace_stop"() : () -> ()
    %77 = tpu.concatenate %28, %44, %60, %76 in 2 : vector<2x8x8xf32>, vector<2x8x8xf32>, vector<2x8x8xf32>, vector<2x8x8xf32> -> vector<2x8x32xf32>
    %78 = vector.shape_cast %77 : vector<2x8x32xf32> to vector<16x32xf32>
    %c0_26 = arith.constant 0 : index
    %c0_27 = arith.constant 0 : index
    %79 = vector.load %arg4[%c0_26, %c0_27] : memref<32x32xf32, #tpu.memory_space<vmem>>, vector<32x32xf32>
    %cst_28 = arith.constant dense<0.000000e+00> : vector<16x32xf32>
    %80 = tpu.matmul %78, %79, %cst_28 {dimension_numbers = #tpu.dot_dimension_numbers<[1], [0], [0], [1], [0, 0, 1, 1], [], []>} : vector<16x32xf32>, vector<32x32xf32>, vector<16x32xf32> -> vector<16x32xf32>
    %c0_29 = arith.constant 0 : index
    %c0_30 = arith.constant 0 : index
    %81 = vector.load %arg5[%c0_29, %c0_30] : memref<1x32xf32, #tpu.memory_space<vmem>>, vector<1x32xf32>
    %82 = vector.broadcast %81 : vector<1x32xf32> to vector<16x32xf32>
    %83 = arith.addf %80, %82 : vector<16x32xf32>
    %c0_31 = arith.constant 0 : index
    %c0_32 = arith.constant 0 : index
    %84 = vector.load %arg6[%c0_31, %c0_32] : memref<1x32xf32, #tpu.memory_space<vmem>>, vector<1x32xf32>
    %c0_33 = arith.constant 0 : index
    %c0_34 = arith.constant 0 : index
    %85 = vector.load %arg7[%c0_33, %c0_34] : memref<1x32xf32, #tpu.memory_space<vmem>>, vector<1x32xf32>
    %cst_35 = arith.constant dense<0.000000e+00> : vector<16xf32>
    %86 = vector.multi_reduction <add>, %83, %cst_35 [1] : vector<16x32xf32> to vector<16xf32>
    %87 = vector.shape_cast %86 : vector<16xf32> to vector<16x1xf32>
    %cst_36 = arith.constant 3.200000e+01 : f32
    %88 = vector.broadcast %cst_36 : f32 to vector<16x1xf32>
    %89 = arith.divf %87, %88 : vector<16x1xf32>
    %90 = vector.broadcast %89 : vector<16x1xf32> to vector<16x32xf32>
    %91 = arith.subf %83, %90 : vector<16x32xf32>
    %92 = arith.mulf %91, %91 : vector<16x32xf32>
    %cst_37 = arith.constant dense<0.000000e+00> : vector<16xf32>
    %93 = vector.multi_reduction <add>, %92, %cst_37 [1] : vector<16x32xf32> to vector<16xf32>
    %94 = vector.shape_cast %93 : vector<16xf32> to vector<16x1xf32>
    %cst_38 = arith.constant 0.0322580636 : f32
    %95 = vector.broadcast %cst_38 : f32 to vector<16x1xf32>
    %96 = arith.mulf %94, %95 : vector<16x1xf32>
    %97 = math.sqrt %96 : vector<16x1xf32>
    %cst_39 = arith.constant 9.99999997E-7 : f32
    %98 = vector.broadcast %cst_39 : f32 to vector<16x1xf32>
    %99 = arith.addf %97, %98 : vector<16x1xf32>
    %cst_40 = arith.constant 1.000000e+00 : f32
    %100 = vector.broadcast %cst_40 : f32 to vector<16x1xf32>
    %101 = arith.divf %100, %99 : vector<16x1xf32>
    %102 = vector.broadcast %101 : vector<16x1xf32> to vector<16x32xf32>
    %103 = arith.mulf %91, %102 : vector<16x32xf32>
    %104 = vector.broadcast %84 : vector<1x32xf32> to vector<16x32xf32>
    %105 = arith.mulf %104, %103 : vector<16x32xf32>
    %106 = vector.broadcast %85 : vector<1x32xf32> to vector<16x32xf32>
    %107 = arith.addf %105, %106 : vector<16x32xf32>
    %108 = arith.addf %1, %107 : vector<16x32xf32>
    %c0_41 = arith.constant 0 : index
    %c0_42 = arith.constant 0 : index
    %109 = vector.load %arg8[%c0_41, %c0_42] : memref<32x64xf32, #tpu.memory_space<vmem>>, vector<32x64xf32>
    %cst_43 = arith.constant dense<0.000000e+00> : vector<16x64xf32>
    %110 = tpu.matmul %108, %109, %cst_43 {dimension_numbers = #tpu.dot_dimension_numbers<[1], [0], [0], [1], [0, 0, 1, 1], [], []>} : vector<16x32xf32>, vector<32x64xf32>, vector<16x64xf32> -> vector<16x64xf32>
    %c0_44 = arith.constant 0 : index
    %c0_45 = arith.constant 0 : index
    %111 = vector.load %arg9[%c0_44, %c0_45] : memref<1x64xf32, #tpu.memory_space<vmem>>, vector<1x64xf32>
    %112 = vector.broadcast %111 : vector<1x64xf32> to vector<16x64xf32>
    %113 = arith.addf %110, %112 : vector<16x64xf32>
    %cst_46 = arith.constant 0.000000e+00 : f32
    %114 = vector.broadcast %cst_46 : f32 to vector<16x64xf32>
    %115 = arith.maximumf %113, %114 : vector<16x64xf32>
    %c0_47 = arith.constant 0 : index
    %c0_48 = arith.constant 0 : index
    %116 = vector.load %arg10[%c0_47, %c0_48] : memref<64x32xf32, #tpu.memory_space<vmem>>, vector<64x32xf32>
    %cst_49 = arith.constant dense<0.000000e+00> : vector<16x32xf32>
    %117 = tpu.matmul %115, %116, %cst_49 {dimension_numbers = #tpu.dot_dimension_numbers<[1], [0], [0], [1], [0, 0, 1, 1], [], []>} : vector<16x64xf32>, vector<64x32xf32>, vector<16x32xf32> -> vector<16x32xf32>
    %c0_50 = arith.constant 0 : index
    %c0_51 = arith.constant 0 : index
    %118 = vector.load %arg11[%c0_50, %c0_51] : memref<1x32xf32, #tpu.memory_space<vmem>>, vector<1x32xf32>
    %119 = vector.broadcast %118 : vector<1x32xf32> to vector<16x32xf32>
    %120 = arith.addf %117, %119 : vector<16x32xf32>
    %c0_52 = arith.constant 0 : index
    %c0_53 = arith.constant 0 : index
    %121 = vector.load %arg12[%c0_52, %c0_53] : memref<1x32xf32, #tpu.memory_space<vmem>>, vector<1x32xf32>
    %c0_54 = arith.constant 0 : index
    %c0_55 = arith.constant 0 : index
    %122 = vector.load %arg13[%c0_54, %c0_55] : memref<1x32xf32, #tpu.memory_space<vmem>>, vector<1x32xf32>
    %cst_56 = arith.constant dense<0.000000e+00> : vector<16xf32>
    %123 = vector.multi_reduction <add>, %120, %cst_56 [1] : vector<16x32xf32> to vector<16xf32>
    %124 = vector.shape_cast %123 : vector<16xf32> to vector<16x1xf32>
    %cst_57 = arith.constant 3.200000e+01 : f32
    %125 = vector.broadcast %cst_57 : f32 to vector<16x1xf32>
    %126 = arith.divf %124, %125 : vector<16x1xf32>
    %127 = vector.broadcast %126 : vector<16x1xf32> to vector<16x32xf32>
    %128 = arith.subf %120, %127 : vector<16x32xf32>
    %129 = arith.mulf %128, %128 : vector<16x32xf32>
    %cst_58 = arith.constant dense<0.000000e+00> : vector<16xf32>
    %130 = vector.multi_reduction <add>, %129, %cst_58 [1] : vector<16x32xf32> to vector<16xf32>
    %131 = vector.shape_cast %130 : vector<16xf32> to vector<16x1xf32>
    %cst_59 = arith.constant 0.0322580636 : f32
    %132 = vector.broadcast %cst_59 : f32 to vector<16x1xf32>
    %133 = arith.mulf %131, %132 : vector<16x1xf32>
    %134 = math.sqrt %133 : vector<16x1xf32>
    %cst_60 = arith.constant 9.99999997E-7 : f32
    %135 = vector.broadcast %cst_60 : f32 to vector<16x1xf32>
    %136 = arith.addf %134, %135 : vector<16x1xf32>
    %cst_61 = arith.constant 1.000000e+00 : f32
    %137 = vector.broadcast %cst_61 : f32 to vector<16x1xf32>
    %138 = arith.divf %137, %136 : vector<16x1xf32>
    %139 = vector.broadcast %138 : vector<16x1xf32> to vector<16x32xf32>
    %140 = arith.mulf %128, %139 : vector<16x32xf32>
    %141 = vector.broadcast %121 : vector<1x32xf32> to vector<16x32xf32>
    %142 = arith.mulf %141, %140 : vector<16x32xf32>
    %143 = vector.broadcast %122 : vector<1x32xf32> to vector<16x32xf32>
    %144 = arith.addf %142, %143 : vector<16x32xf32>
    %145 = arith.addf %108, %144 : vector<16x32xf32>
    %146 = vector.shape_cast %145 : vector<16x32xf32> to vector<2x8x32xf32>
    %c0_62 = arith.constant 0 : index
    %c0_63 = arith.constant 0 : index
    %c0_64 = arith.constant 0 : index
    %147 = vector.load %arg14[%c0_62, %c0_63, %c0_64] : memref<2x8x32xf32, #tpu.memory_space<vmem>>, vector<2x8x32xf32>
    tpu.vector_store %arg14[%c0_62, %c0_63, %c0_64], %146 {strides = array<i32>} : memref<2x8x32xf32, #tpu.memory_space<vmem>>, vector<2x8x32xf32>,
    return
  }
  func.func @transform_0(%arg0: i32) -> (i32, i32, i32) {
    %c0_i32 = arith.constant 0 : i32
    %c0_i32_0 = arith.constant 0 : i32
    %c0_i32_1 = arith.constant 0 : i32
    return %arg0, %c0_i32, %c0_i32_0 : i32, i32, i32
  }
  func.func @transform_1(%arg0: i32) -> (i32, i32) {
    %c0_i32 = arith.constant 0 : i32
    %c0_i32_0 = arith.constant 0 : i32
    %c0_i32_1 = arith.constant 0 : i32
    return %c0_i32, %c0_i32_0 : i32, i32
  }
  func.func @transform_2(%arg0: i32) -> (i32, i32) {
    %c0_i32 = arith.constant 0 : i32
    %c0_i32_0 = arith.constant 0 : i32
    %c0_i32_1 = arith.constant 0 : i32
    return %c0_i32, %c0_i32_0 : i32, i32
  }
  func.func @transform_3(%arg0: i32) -> (i32, i32) {
    %c0_i32 = arith.constant 0 : i32
    %c0_i32_0 = arith.constant 0 : i32
    %c0_i32_1 = arith.constant 0 : i32
    return %c0_i32, %c0_i32_0 : i32, i32
  }
  func.func @transform_4(%arg0: i32) -> (i32, i32) {
    %c0_i32 = arith.constant 0 : i32
    %c0_i32_0 = arith.constant 0 : i32
    %c0_i32_1 = arith.constant 0 : i32
    return %c0_i32, %c0_i32_0 : i32, i32
  }
  func.func @transform_5(%arg0: i32) -> (i32, i32) {
    %c0_i32 = arith.constant 0 : i32
    %c0_i32_0 = arith.constant 0 : i32
    %c0_i32_1 = arith.constant 0 : i32
    return %c0_i32, %c0_i32_0 : i32, i32
  }
  func.func @transform_6(%arg0: i32) -> (i32, i32) {
    %c0_i32 = arith.constant 0 : i32
    %c0_i32_0 = arith.constant 0 : i32
    %c0_i32_1 = arith.constant 0 : i32
    return %c0_i32, %c0_i32_0 : i32, i32
  }
  func.func @transform_7(%arg0: i32) -> (i32, i32) {
    %c0_i32 = arith.constant 0 : i32
    %c0_i32_0 = arith.constant 0 : i32
    %c0_i32_1 = arith.constant 0 : i32
    return %c0_i32, %c0_i32_0 : i32, i32
  }
  func.func @transform_8(%arg0: i32) -> (i32, i32) {
    %c0_i32 = arith.constant 0 : i32
    %c0_i32_0 = arith.constant 0 : i32
    %c0_i32_1 = arith.constant 0 : i32
    return %c0_i32, %c0_i32_0 : i32, i32
  }
  func.func @transform_9(%arg0: i32) -> (i32, i32) {
    %c0_i32 = arith.constant 0 : i32
    %c0_i32_0 = arith.constant 0 : i32
    %c0_i32_1 = arith.constant 0 : i32
    return %c0_i32, %c0_i32_0 : i32, i32
  }
  func.func @transform_10(%arg0: i32) -> (i32, i32) {
    %c0_i32 = arith.constant 0 : i32
    %c0_i32_0 = arith.constant 0 : i32
    %c0_i32_1 = arith.constant 0 : i32
    return %c0_i32, %c0_i32_0 : i32, i32
  }
  func.func @transform_11(%arg0: i32) -> (i32, i32) {
    %c0_i32 = arith.constant 0 : i32
    %c0_i32_0 = arith.constant 0 : i32
    %c0_i32_1 = arith.constant 0 : i32
    return %c0_i32, %c0_i32_0 : i32, i32
  }
  func.func @transform_12(%arg0: i32) -> (i32, i32) {
    %c0_i32 = arith.constant 0 : i32
    %c0_i32_0 = arith.constant 0 : i32
    %c0_i32_1 = arith.constant 0 : i32
    return %c0_i32, %c0_i32_0 : i32, i32
  }
  func.func @transform_13(%arg0: i32) -> (i32, i32, i32) {
    %c0_i32 = arith.constant 0 : i32
    %c0_i32_0 = arith.constant 0 : i32
    %c0_i32_1 = arith.constant 0 : i32
    return %arg0, %c0_i32, %c0_i32_0 : i32, i32, i32
  }
}

</mosaic_0001>

<bundles_post_ra>
// kernel: tpu_custom_call.1
= control target key start
LH: loop header
LB: loop body
LE: loop exit
PB: predicated region body
PF: predicated region fallthrough
CT: control target
= control target key end

     0   :  { %18 = vsyncpa [#allocation3], 0  ;;  %s1624_s0 = inlined_call_operand.hbm [shape: f32[2,8,32], index: 0, kind: input, shape index: {}]   ;;  %s1625_s1 = inlined_call_operand.vmem [shape: f32[32,96], index: 1, kind: input, shape index: {}]   ;;  %s1626_s2 = inlined_call_operand.vmem [shape: f32[1,96], index: 2, kind: input, shape index: {}]   ;;  %s1627_s3 = inlined_call_operand.vmem [shape: f32[32,32], index: 3, kind: input, shape index: {}]   ;;  %s1628_s4 = inlined_call_operand.vmem [shape: f32[1,32], index: 4, kind: input, shape index: {}]   ;;  %s1629_s5 = inlined_call_operand.vmem [shape: f32[1,32], index: 5, kind: input, shape index: {}]   ;;  %s1630_s6 = inlined_call_operand.vmem [shape: f32[1,32], index: 6, kind: input, shape index: {}]   ;;  %s1631_s7 = inlined_call_operand.vmem [shape: f32[32,64], index: 7, kind: input, shape index: {}]   ;;  %s1632_s8 = inlined_call_operand.vmem [shape: f32[1,64], index: 8, kind: input, shape index: {}]   ;;  %s1633_s9 = inlined_call_operand.vmem [shape: f32[64,32], index: 9, kind: input, shape index: {}]   ;;  %s1634_s10 = inlined_call_operand.vmem [shape: f32[1,32], index: 10, kind: input, shape index: {}]   ;;  %s1635_s11 = inlined_call_operand.vmem [shape: f32[1,32], index: 11, kind: input, shape index: {}]   ;;  %s1636_s12 = inlined_call_operand.vmem [shape: f32[1,32], index: 12, kind: input, shape index: {}]   ;;  %s1637_s13 = inlined_call_operand.hbm [shape: f32[2,8,32], index: 13, kind: output, shape index: {}]  }
   0x1   :  { %19 = vsyncpa [#allocation4], 0  ;;  %s24_s27 = sshll.u32 %s1624_s0, 4  ;;  %s1254_s28 = smov [#allocation2]   ;;  %s25_s27 = int_to_ptr.hbm [resolvable:$true] %s24_s27 }
   0x2   :  { %s26_s29 = sshll.u32 %s1254_s28, 4  ;;  %s1255_s30 = smov 128   ;;  %s27_s29 = int_to_ptr.vmem [resolvable:$true] %s26_s29 }
   0x3   :  { %s1256_s14 = smov 8  }
   0x4   :  { %32 = dma.hbm_to_vmem [thread:$0]  %s25_s27, 256, %s27_s29, [#allocation3], %s1255_s30, %s1255_s30, %s1256_s14  }
   0x5   :  { %1250 = dma.done.wait [#allocation3], 256  }
   0x6   :  { %1251 = vsyncadd [#allocation3], 4294967040  ;;  %v66_v0 = vld [vmem:[%s1625_s1 + $0x18] sm:$0xff]  ;;  %v65_v1 = vld [vmem:[%s1625_s1 + $0x10] sm:$0xff]  ;;  %vm71_vm0 = vcmask 261120   ;;  %s1258_s24 = smov 96  }
   0x7   :  { %90 = vmatpush.msra.mxu0 %v66_v0  ;;  %v64_v2 = vld [vmem:[%s1625_s1 + $0x8] sm:$0xff]  ;;  %v63_v3 = vld [vmem:[%s1625_s1] sm:$0xff]  ;;  %s1257_s1 = smov 64   ;;  %s1259_s25 = smov 88   ;;  %vm104_vm1 = vcmask 64512  }
   0x8   :  { %v1360_v4 = vld [vmem:[#allocation2] sm:$0xff]  ;;  %v1364_v5 = vld [vmem:[#allocation2 + $0x8] sm:$0xff]  ;;  %s1260_s26 = smov 120   ;;  %s1262_s27 = smov 112  }
   0x9   :  { %91 = vmatpush.msra.mxu0 %v65_v1  ;;  %v1144_v6 = vld [vmem:[%s1626_s2] ss:$0 sm:$0xff]  ;;  %s1261_s2 = smov 80   ;;  %s1263_s28 = smov 104  }
   0xa   :  { %s1264_s29 = smov 72   ;;  %s1265_s15 = smov 56  }
   0xb   :  { %92 = vmatpush.msra.mxu0 %v64_v2  ;;  %s1266_s16 = smov 40   ;;  %s1267_s17 = smov 48  }
   0xc   :  { %s1268_s18 = smov 16   ;;  %s1269_s0 = smov 24  }
   0xd   :  { %93 = vmatpush.msra.mxu0 %v63_v3  ;;  %s1081_s20 = sshll.u32 %s1637_s13, 4  ;;  %s1082_s20 = int_to_ptr.hbm [resolvable:$true] %s1081_s20 }
   0xe   :  { %1094 = vmatmul.msk.f32.vlgmr.msra.gmra.mxu0 %vm71_vm0, %v1360_v4 }
  0x16   :  { %1095 = vmatmul.msk.f32.gmra.mxu0 %vm71_vm0, %v1364_v5 }
  0x8b   :  { %v95_v7 = vpop.f32.mrf.mxu0 }
  0x8c   :  { %v1371_v8 = vadd.f32 %v1144_v6, %v95_v7 }
  0x8e   :  { %206 = vrot.lane.b32.xlu2 %v1371_v8, %s1257_s1  ;;  %102 = vrot.lane.b32.xlu0 %v1371_v8, %s1258_s24 }
  0x93   :  { %v98_v9 = vpop.f32.mrf.mxu0 }
  0x94   :  { %v1376_v10 = vadd.f32 %v1144_v6, %v98_v9 }
  0x96   :  { %130 = vrot.lane.b32.xlu1 %v1376_v10, %s1258_s24  ;;  %288 = vrot.lane.b32.xlu2 %v1376_v10, %s1259_s25 }
  0x9e   :  { %258 = vrot.lane.b32.xlu1 %v1371_v8, %s1260_s26  ;;  %286 = vrot.lane.b32.xlu2 %v1376_v10, %s1260_s26 }
  0xa6   :  { %260 = vrot.lane.b32.xlu2 %v1371_v8, %s1259_s25 }
  0xae   :  { %418 = vrot.lane.b32.xlu2 %v1371_v8, %s1261_s2 }
  0xb6   :  { %416 = vrot.lane.b32.xlu2 %v1371_v8, %s1262_s27 }
  0xbe   :  { %574 = vrot.lane.b32.xlu2 %v1371_v8, %s1263_s28 }
  0xc6   :  { %604 = vrot.lane.b32.xlu2 %v1376_v10, %s1264_s29 }
  0xe8   :  { %v207_v11 = vpop.permute.xlu2 %206 }
  0xf0   :  { %v289_v12 = vpop.permute.xlu2 %288 }
  0xf8   :  { %v287_v13 = vpop.permute.xlu2 %286 }
 0x100   :  { %v103_v14 = vpop.permute.xlu0 %102  ;;  %v261_v15 = vpop.permute.xlu2 %260 }
 0x101   :  { %1096 = vmatpush.xpose.msk.msra.mxu1 %vm104_vm1, %v103_v14 }
 0x104   :  { %1097 = vmatmul.msk.f32.vlgmr.msra.gmra.mxu1 %vm104_vm1, %v1371_v8 }
 0x105   :  { %227 = vmatpush.msrb.mxu1 %v207_v11 }
 0x107   :  { %1102 = vmatpush.xpose.msk.msra.mxu1 %vm104_vm1, %v261_v15 }
 0x108   :  { %v131_v16 = vpop.permute.xlu1 %130  ;;  %v419_v17 = vpop.permute.xlu2 %418 }
 0x109   :  { %1098 = vmatpush.xpose.msk.msra.mxu2 %vm104_vm1, %v131_v16 }
 0x10c   :  { %1099 = vmatmul.msk.f32.vlgmr.msra.gmra.mxu2 %vm104_vm1, %v1376_v10 }
 0x10d   :  { %1104 = vmatpush.xpose.msk.msrb.mxu2 %vm104_vm1, %v289_v12 }
 0x110   :  { %v417_v18 = vpop.permute.xlu2 %416  ;;  %v259_v32 = vpop.permute.xlu1 %258 }
 0x111   :  { %1108 = vmatpush.xpose.msk.msra.mxu2 %vm104_vm1, %v419_v17 }
 0x114   :  { %1105 = vmatmul.msk.f32.vlgmr.msrb.gmra.mxu2 %vm104_vm1, %v287_v13 }
 0x118   :  { %v575_v46 = vpop.permute.xlu2 %574 }
 0x11c   :  { %1109 = vmatmul.msk.f32.vlgmr.msra.gmra.mxu2 %vm104_vm1, %v417_v18 }
 0x120   :  { %v605_v48 = vpop.permute.xlu2 %604 }
 0x181   :  { %v126_v19 = vpop.f32.mrf.mxu1 }
 0x182   :  { %v156_v20 = vsel %vm104_vm1, %v126_v19, -inf }
 0x183   :  { %157 = vmax.xlane.f32.xlu0 %v156_v20 }
 0x18f   :  { %v153_v21 = vpop.f32.mrf.mxu2 }
 0x190   :  { %v159_v22 = vsel %vm104_vm1, %v153_v21, -inf }
 0x191   :  { %160 = vmax.xlane.f32.xlu2 %v159_v22 }
 0x197   :  { %444 = vrot.lane.b32.xlu0 %v1376_v10, %s1262_s27  ;;  %v311_v23 = vpop.f32.mrf.mxu2 }
 0x198   :  { %v317_v31 = vsel %vm104_vm1, %v311_v23, -inf }
 0x199   :  { %318 = vmax.xlane.f32.xlu2 %v317_v31 }
 0x19f   :  { %v1403_v24 = vpop.f32.mrf.mxu2 }
 0x1a0   :  { %v472_v25 = vsel %vm104_vm1, %v1403_v24, -inf }
 0x1c1   :  { %473 = vmax.xlane.f32.xlu0 %v472_v25 }
 0x1f6   :  { %v158_v26 = vpop.xlane.xlu0 %157 }
 0x1f7   :  { %v162_v27 = vsub.f32 %v126_v19, %v158_v26 }
 0x1f9   :  { %v164_v28 = vmul.f32 1.442695, %v162_v27 }
 0x1fb   :  { %1152 = vpow2.f32 %v164_v28 }
 0x201   :  { %v1153_v29 = vpop.eup %1152 }
 0x202   :  { %v168_v30 = vsel %vm104_vm1, %v1153_v29, 0.0 }
 0x203   :  { %169 = vadd.xlane.f32.xlu1 %v168_v30 }
 0x204   :  { %v161_v51 = vpop.xlane.xlu2 %160 }
 0x205   :  { %v163_v54 = vsub.f32 %v153_v21, %v161_v51 }
 0x207   :  { %v166_v58 = vmul.f32 1.442695, %v163_v54 }
 0x209   :  { %v445_v49 = vpop.permute.xlu0 %444 }
 0x20c   :  { %v319_v53 = vpop.xlane.xlu2 %318 }
 0x20d   :  { %v321_v56 = vsub.f32 %v311_v23, %v319_v53 }
 0x20f   :  { %v324_v60 = vmul.f32 1.442695, %v321_v56 }
 0x21c   :  { %576 = vrot.lane.b32.xlu1 %v1371_v8, %s1264_s29 }
 0x224   :  { %446 = vrot.lane.b32.xlu1 %v1376_v10, %s1261_s2 }
 0x22c   :  { %602 = vrot.lane.b32.xlu1 %v1376_v10, %s1263_s28 }
 0x234   :  { %v474_v59 = vpop.xlane.xlu0 %473 }
 0x235   :  { %v478_v62 = vsub.f32 %v1403_v24, %v474_v59 }
 0x237   :  { %v480_v2 = vmul.f32 1.442695, %v478_v62 }
 0x276   :  { %v170_v33 = vpop.xlane.xlu1 %169 }
 0x277   :  { %1154 = vrcp.f32 %v170_v33  ;;  %v185_v37 = vand.u32 2147483648, %v170_v33  ;;  %v183_v39 = vand.u32 2147483647, %v170_v33  ;;  %vm179_vm3 = vweird.f32 %v170_v33 }
 0x278   :  { %1156 = vpow2.f32 %v166_v58 }
 0x279   :  { %v186_v41 = vor.u32 1.1754944e-38, %v185_v37  ;;  %vm184_vm5 = vcmp.eq.f32.partialorder %v183_v39, 8.507059e+37  ;;  %1158 = vpow2.f32 %v324_v60 }
 0x27a   :  { %1160 = vpow2.f32 %v480_v2 }
 0x27d   :  { %v1155_v34 = vpop.eup %1154 }
 0x27e   :  { %v175_v35 = vmul.f32 %v1155_v34, %v170_v33  ;;  %vm180_vm2 = vweird.f32 %v1155_v34  ;;  %v1428_v3 = vpop.eup %1156 }
 0x27f   :  { %vm181_vm4 = vmor %vm179_vm3, %vm180_vm2  ;;  %v1430_v6 = vpop.eup %1158  ;;  %v171_v9 = vsel %vm104_vm1, %v1428_v3, 0.0 }
 0x280   :  { %v176_v36 = vsub.f32 1.0, %v175_v35  ;;  %v329_v12 = vsel %vm104_vm1, %v1430_v6, 0.0  ;;  %v1437_v13 = vpop.eup %1160 }
 0x281   :  { %v484_v14 = vsel %vm104_vm1, %v1437_v13, 0.0 }
 0x282   :  { %v177_v38 = vmul.f32 %v1155_v34, %v176_v36 }
 0x284   :  { %v178_v40 = vadd.f32 %v1155_v34, %v177_v38 }
 0x286   :  { %v182_v42 = vsel %vm181_vm4, %v1155_v34, %v178_v40 }
 0x287   :  { %v187_v43 = vsel %vm184_vm5, %v186_v41, %v182_v42 }
 0x288   :  { %v204_v44 = vmul.f32 %v1153_v29, %v187_v43 }
 0x28a   :  { %1100 = vmatmul.msk.f32.vlgmr.msrb.gmra.mxu1 %vm104_vm1, %v204_v44 }
 0x28e   :  { %v577_v45 = vpop.permute.xlu1 %576 }
 0x28f   :  { %1114 = vmatpush.xpose.msk.msrb.mxu2 %vm104_vm1, %v577_v45 }
 0x292   :  { %1103 = vmatmul.msk.f32.vlgmr.msra.gmra.mxu1 %vm104_vm1, %v259_v32  ;;  %1115 = vmatmul.msk.f32.vlgmr.msrb.gmra.mxu2 %vm104_vm1, %v575_v46 }
 0x296   :  { %v447_v47 = vpop.permute.xlu1 %446 }
 0x297   :  { %1110 = vmatpush.xpose.msk.msrb.mxu0 %vm104_vm1, %v447_v47 }
 0x29a   :  { %1111 = vmatmul.msk.f32.vlgmr.msrb.gmra.mxu0 %vm104_vm1, %v445_v49 }
 0x29b   :  { %1116 = vmatpush.xpose.msk.msra.mxu0 %vm104_vm1, %v605_v48 }
 0x29e   :  { %v603_v50 = vpop.permute.xlu1 %602 }
 0x2a2   :  { %1117 = vmatmul.msk.f32.vlgmr.msra.gmra.mxu0 %vm104_vm1, %v603_v50 }
 0x307   :  { %v1422_v52 = vpop.f32.mrf.mxu1 }
 0x30f   :  { %v283_v55 = vpop.f32.mrf.mxu1 }
 0x310   :  { %v314_v57 = vsel %vm104_vm1, %v283_v55, -inf }
 0x311   :  { %315 = vmax.xlane.f32.xlu1 %v314_v57 }
 0x315   :  { %v599_v61 = vpop.f32.mrf.mxu2 }
 0x316   :  { %v630_v0 = vsel %vm104_vm1, %v599_v61, -inf }
 0x317   :  { %v469_v63 = vpop.f32.mrf.mxu0 }
 0x318   :  { %v475_v1 = vsel %vm104_vm1, %v469_v63, -inf }
 0x319   :  { %631 = vmax.xlane.f32.xlu1 %v630_v0  ;;  %476 = vmax.xlane.f32.xlu0 %v475_v1 }
 0x31f   :  { %v627_v7 = vpop.f32.mrf.mxu0 }
 0x320   :  { %v633_v11 = vsel %vm104_vm1, %v627_v7, -inf }
 0x321   :  { %172 = vadd.xlane.f32.xlu1 %v171_v9  ;;  %634 = vmax.xlane.f32.xlu2 %v633_v11 }
 0x322   :  { %330 = vadd.xlane.f32.xlu0 %v329_v12 }
 0x329   :  { %485 = vadd.xlane.f32.xlu2 %v484_v14 }
 0x336   :  { %364 = vrot.lane.b32.xlu0 %v1371_v8, %s1265_s15 }
 0x33a   :  { %232 = vrot.lane.b32.xlu1 %v1376_v10, %s1257_s1 }
 0x33e   :  { %390 = vrot.lane.b32.xlu0 %v1376_v10, %s1265_s15 }
 0x384   :  { %v316_v15 = vpop.xlane.xlu1 %315 }
 0x385   :  { %v320_v16 = vsub.f32 %v283_v55, %v316_v15 }
 0x387   :  { %v322_v17 = vmul.f32 1.442695, %v320_v16 }
 0x389   :  { %1162 = vpow2.f32 %v322_v17 }
 0x38c   :  { %v632_v18 = vpop.xlane.xlu1 %631  ;;  %v477_v19 = vpop.xlane.xlu0 %476 }
 0x38d   :  { %v636_v20 = vsub.f32 %v599_v61, %v632_v18  ;;  %v479_v23 = vsub.f32 %v469_v63, %v477_v19 }
 0x38f   :  { %v1445_v21 = vpop.eup %1162  ;;  %v638_v22 = vmul.f32 1.442695, %v636_v20  ;;  %v482_v25 = vmul.f32 1.442695, %v479_v23 }
 0x390   :  { %v326_v24 = vsel %vm104_vm1, %v1445_v21, 0.0 }
 0x391   :  { %1164 = vpow2.f32 %v638_v22  ;;  %327 = vadd.xlane.f32.xlu0 %v326_v24 }
 0x394   :  { %v173_v26 = vpop.xlane.xlu1 %172  ;;  %v635_v27 = vpop.xlane.xlu2 %634 }
 0x395   :  { %1166 = vrcp.f32 %v173_v26  ;;  %v637_v28 = vsub.f32 %v627_v7, %v635_v27  ;;  %v331_v29 = vpop.xlane.xlu0 %330  ;;  %v200_v46 = vand.u32 2147483648, %v173_v26  ;;  %vm194_vm7 = vweird.f32 %v173_v26 }
 0x396   :  { %1168 = vrcp.f32 %v331_v29  ;;  %v198_v47 = vand.u32 2147483647, %v173_v26  ;;  %v358_v51 = vand.u32 2147483648, %v331_v29  ;;  %vm352_vm10 = vweird.f32 %v331_v29 }
 0x397   :  { %v1449_v30 = vpop.eup %1164  ;;  %1170 = vpow2.f32 %v482_v25  ;;  %v640_v31 = vmul.f32 1.442695, %v637_v28  ;;  %v201_v50 = vor.u32 1.1754944e-38, %v200_v46  ;;  %v356_v53 = vand.u32 2147483647, %v331_v29 }
 0x398   :  { %v642_v32 = vsel %vm104_vm1, %v1449_v30, 0.0  ;;  %vm199_vm11 = vcmp.eq.f32.partialorder %v198_v47, 8.507059e+37  ;;  %v359_v57 = vor.u32 1.1754944e-38, %v358_v51 }
 0x399   :  { %1172 = vpow2.f32 %v640_v31  ;;  %643 = vadd.xlane.f32.xlu2 %v642_v32  ;;  %vm357_vm13 = vcmp.eq.f32.partialorder %v356_v53, 8.507059e+37 }
 0x39b   :  { %v1167_v33 = vpop.eup %1166 }
 0x39c   :  { %v1169_v34 = vpop.eup %1168  ;;  %v190_v35 = vmul.f32 %v1167_v33, %v173_v26  ;;  %vm195_vm6 = vweird.f32 %v1167_v33  ;;  %v486_v63 = vpop.xlane.xlu2 %485 }
 0x39d   :  { %v1453_v36 = vpop.eup %1170  ;;  %v348_v37 = vmul.f32 %v1169_v34, %v331_v29  ;;  %vm196_vm8 = vmor %vm194_vm7, %vm195_vm6  ;;  %vm353_vm9 = vweird.f32 %v1169_v34  ;;  %1174 = vrcp.f32 %v486_v63  ;;  %v501_v25 = vand.u32 2147483648, %v486_v63 }
 0x39e   :  { %v191_v38 = vsub.f32 1.0, %v190_v35  ;;  %v487_v43 = vsel %vm104_vm1, %v1453_v36, 0.0  ;;  %vm354_vm12 = vmor %vm352_vm10, %vm353_vm9  ;;  %vm495_vm5 = vweird.f32 %v486_v63  ;;  %v499_v27 = vand.u32 2147483647, %v486_v63 }
 0x39f   :  { %v1455_v39 = vpop.eup %1172  ;;  %v349_v40 = vsub.f32 1.0, %v348_v37  ;;  %v502_v32 = vor.u32 1.1754944e-38, %v501_v25 }
 0x3a0   :  { %v192_v41 = vmul.f32 %v1167_v33, %v191_v38  ;;  %v645_v42 = vsel %vm104_vm1, %v1455_v39, 0.0  ;;  %vm500_vm7 = vcmp.eq.f32.partialorder %v499_v27, 8.507059e+37 }
 0x3a1   :  { %646 = vadd.xlane.f32.xlu1 %v645_v42  ;;  %488 = vadd.xlane.f32.xlu2 %v487_v43  ;;  %v350_v44 = vmul.f32 %v1169_v34, %v349_v40 }
 0x3a2   :  { %v193_v45 = vadd.f32 %v1167_v33, %v192_v41 }
 0x3a3   :  { %v351_v48 = vadd.f32 %v1169_v34, %v350_v44  ;;  %v1175_v1 = vpop.eup %1174 }
 0x3a4   :  { %v197_v49 = vsel %vm196_vm8, %v1167_v33, %v193_v45  ;;  %v491_v2 = vmul.f32 %v1175_v1, %v486_v63  ;;  %vm496_vm3 = vweird.f32 %v1175_v1 }
 0x3a5   :  { %680 = vrot.lane.b32.xlu0 %v1371_v8, %s1266_s16  ;;  %v202_v55 = vsel %vm199_vm11, %v201_v50, %v197_v49  ;;  %v355_v56 = vsel %vm354_vm12, %v1169_v34, %v351_v48  ;;  %vm497_vm6 = vmor %vm495_vm5, %vm496_vm3 }
 0x3a6   :  { %v205_v59 = vmul.f32 %v1428_v3, %v202_v55  ;;  %v360_v60 = vsel %vm357_vm13, %v359_v57, %v355_v56  ;;  %v492_v11 = vsub.f32 1.0, %v491_v2 }
 0x3a7   :  { %v363_v62 = vmul.f32 %v1430_v6, %v360_v60 }
 0x3a8   :  { %v365_v54 = vpop.permute.xlu0 %364  ;;  %v493_v14 = vmul.f32 %v1175_v1, %v492_v11 }
 0x3aa   :  { %v494_v23 = vadd.f32 %v1175_v1, %v493_v14 }
 0x3ac   :  { %v233_v58 = vpop.permute.xlu1 %232  ;;  %v498_v31 = vsel %vm497_vm6, %v1175_v1, %v494_v23  ;;  %vm758_vm6 = vcmask 130048  }
 0x3ad   :  { %253 = vmatpush.msra.mxu3 %v233_v58  ;;  %706 = vrot.lane.b32.xlu0 %v1376_v10, %s1266_s16  ;;  %v503_v38 = vsel %vm500_vm7, %v502_v32, %v498_v31  ;;  %vm761_vm7 = vcmask 195584   ;;  %v1145_v31 = vld [vmem:[%s1628_s4] ss:$0 sm:$0xff] }
 0x3ae   :  { %1101 = vmatmul.msk.f32.vlgmr.msra.gmra.mxu3 %vm104_vm1, %v205_v59  ;;  %v520_v46 = vmul.f32 %v1437_v13, %v503_v38  ;;  %v1270_v38 = vmov 32.0  }
 0x3af   :  { %385 = vmatpush.msrb.mxu3 %v365_v54 }
 0x3b0   :  { %v391_v61 = vpop.permute.xlu0 %390 }
 0x3b1   :  { %411 = vmatpush.msrb.mxu1 %v391_v61 }
 0x3b2   :  { %1107 = vmatmul.msk.f32.vlgmr.msrb.gmra.mxu1 %vm104_vm1, %v363_v62 }
 0x3b9   :  { %522 = vrot.lane.b32.xlu2 %v1371_v8, %s1267_s17 }
 0x3c1   :  { %548 = vrot.lane.b32.xlu2 %v1376_v10, %s1267_s17 }
 0x404   :  { %v328_v0 = vpop.xlane.xlu0 %327 }
 0x405   :  { %1176 = vrcp.f32 %v328_v0  ;;  %v343_v8 = vand.u32 2147483648, %v328_v0  ;;  %vm337_vm15 = vweird.f32 %v328_v0  ;;  %v341_v10 = vand.u32 2147483647, %v328_v0 }
 0x407   :  { %v344_v24 = vor.u32 1.1754944e-38, %v343_v8  ;;  %vm342_vm4 = vcmp.eq.f32.partialorder %v341_v10, 8.507059e+37  ;;  %v765_v10 = vld [vmem:[%s1627_s3 + $0x8] sm:$0xff] }
 0x40b   :  { %v1177_v3 = vpop.eup %1176 }
 0x40c   :  { %v333_v7 = vmul.f32 %v1177_v3, %v328_v0  ;;  %v1469_v9 = vpop.xlane.xlu2 %643  ;;  %vm338_vm14 = vweird.f32 %v1177_v3 }
 0x40d   :  { %1178 = vrcp.f32 %v1469_v9  ;;  %vm1472_vm2 = vmor %vm337_vm15, %vm338_vm14  ;;  %vm653_vm9 = vweird.f32 %v1469_v9  ;;  %v657_v47 = vand.u32 2147483647, %v1469_v9 }
 0x40e   :  { %v334_v6 = vsub.f32 1.0, %v333_v7 }
 0x40f   :  { %vm658_vm13 = vcmp.eq.f32.partialorder %v657_v47, 8.507059e+37 }
 0x410   :  { %v335_v12 = vmul.f32 %v1177_v3, %v334_v6 }
 0x412   :  { %v336_v15 = vadd.f32 %v1177_v3, %v335_v12 }
 0x413   :  { %v1179_v16 = vpop.eup %1178 }
 0x414   :  { %v649_v18 = vmul.f32 %v1179_v16, %v1469_v9  ;;  %v1477_v19 = vpop.xlane.xlu1 %646  ;;  %v489_v20 = vpop.xlane.xlu2 %488  ;;  %v340_v22 = vsel %vm1472_vm2, %v1177_v3, %v336_v15  ;;  %vm654_vm8 = vweird.f32 %v1179_v16  ;;  %v766_v15 = vld [vmem:[%s1627_s3 + $0x10] sm:$0xff] }
 0x415   :  { %1180 = vrcp.f32 %v1477_v19  ;;  %v345_v28 = vsel %vm342_vm4, %v344_v24, %v340_v22  ;;  %v514_v48 = vand.u32 2147483647, %v489_v20  ;;  %v516_v49 = vand.u32 2147483648, %v489_v20  ;;  %vm655_vm10 = vmor %vm653_vm9, %vm654_vm8 }
 0x416   :  { %v650_v26 = vsub.f32 1.0, %v649_v18  ;;  %1182 = vrcp.f32 %v489_v20  ;;  %v362_v29 = vmul.f32 %v1445_v21, %v345_v28  ;;  %v659_v21 = vand.u32 2147483648, %v1469_v9 }
 0x417   :  { %v681_v35 = vpop.permute.xlu0 %680  ;;  %vm510_vm12 = vweird.f32 %v489_v20  ;;  %vm515_vm15 = vcmp.eq.f32.partialorder %v514_v48, 8.507059e+37  ;;  %v517_v13 = vor.u32 1.1754944e-38, %v516_v49  ;;  %v674_v61 = vand.u32 2147483648, %v1477_v19 }
 0x418   :  { %v651_v33 = vmul.f32 %v1179_v16, %v650_v26  ;;  %1106 = vmatmul.msk.f32.vlgmr.msrb.gmra.mxu3 %vm104_vm1, %v362_v29  ;;  %v660_v54 = vor.u32 1.1754944e-38, %v659_v21  ;;  %vm668_vm3 = vweird.f32 %v1477_v19  ;;  %v672_v63 = vand.u32 2147483647, %v1477_v19 }
 0x419   :  { %v675_v3 = vor.u32 1.1754944e-38, %v674_v61  ;;  %1184 = vrcp.f32 %v1270_v38  ;;  %v1146_v38 = vld [vmem:[%s1629_s5] ss:$0 sm:$0xff] }
 0x41a   :  { %v652_v43 = vadd.f32 %v1179_v16, %v651_v33  ;;  %vm673_vm5 = vcmp.eq.f32.partialorder %v672_v63, 8.507059e+37 }
 0x41b   :  { %v1181_v34 = vpop.eup %1180 }
 0x41c   :  { %v1183_v37 = vpop.eup %1182  ;;  %v664_v40 = vmul.f32 %v1181_v34, %v1477_v19  ;;  %v523_v41 = vpop.permute.xlu2 %522  ;;  %v656_v53 = vsel %vm655_vm10, %v1179_v16, %v652_v43  ;;  %vm669_vm2 = vweird.f32 %v1181_v34  ;;  %v764_v16 = vld [vmem:[%s1627_s3] sm:$0xff] }
 0x41d   :  { %v506_v42 = vmul.f32 %v1183_v37, %v489_v20  ;;  %543 = vmatpush.msra.mxu3 %v523_v41  ;;  %vm511_vm11 = vweird.f32 %v1183_v37  ;;  %v661_v57 = vsel %vm658_vm13, %v660_v54, %v656_v53  ;;  %vm670_vm4 = vmor %vm668_vm3, %vm669_vm2 }
 0x41e   :  { %v665_v44 = vsub.f32 1.0, %v664_v40  ;;  %vm512_vm14 = vmor %vm510_vm12, %vm511_vm11  ;;  %v678_v1 = vmul.f32 %v1449_v30, %v661_v57 }
 0x41f   :  { %701 = vmatpush.msrb.mxu3 %v681_v35  ;;  %v507_v45 = vsub.f32 1.0, %v506_v42  ;;  %v707_v60 = vpop.permute.xlu0 %706  ;;  %v1185_v40 = vpop.eup %1184 }
 0x420   :  { %v666_v50 = vmul.f32 %v1181_v34, %v665_v44  ;;  %1112 = vmatmul.msk.f32.vlgmr.msra.gmra.mxu3 %vm104_vm1, %v520_v46  ;;  %v810_v41 = vmul.f32 32.0, %v1185_v40 }
 0x421   :  { %v508_v51 = vmul.f32 %v1183_v37, %v507_v45 }
 0x422   :  { %v667_v58 = vadd.f32 %v1181_v34, %v666_v50  ;;  %v811_v42 = vsub.f32 1.0, %v810_v41 }
 0x423   :  { %v509_v55 = vadd.f32 %v1183_v37, %v508_v51 }
 0x424   :  { %v549_v56 = vpop.permute.xlu2 %548  ;;  %v671_v2 = vsel %vm670_vm4, %v1181_v34, %v667_v58  ;;  %v812_v43 = vmul.f32 %v1185_v40, %v811_v42 }
 0x425   :  { %v513_v59 = vsel %vm512_vm14, %v1183_v37, %v509_v55  ;;  %569 = vmatpush.msra.mxu1 %v549_v56  ;;  %v676_v7 = vsel %vm673_vm5, %v675_v3, %v671_v2  ;;  %v902_v56 = vld [vmem:[%s1631_s7 + $0x10] sm:$0xff] }
 0x426   :  { %v518_v62 = vsel %vm515_vm15, %v517_v13, %v513_v59  ;;  %v679_v9 = vmul.f32 %v1455_v39, %v676_v7  ;;  %v767_v39 = vld [vmem:[%s1627_s3 + $0x18] sm:$0xff]  ;;  %v813_v44 = vadd.f32 %v1185_v40, %v812_v43  ;;  %v901_v59 = vld [vmem:[%s1631_s7 + $0x8] sm:$0xff]  ;;  %v1147_v43 = vld [vmem:[%s1630_s6] ss:$0 sm:$0xff] }
 0x427   :  { %727 = vmatpush.msrb.mxu1 %v707_v60  ;;  %v521_v0 = vmul.f32 %v1453_v36, %v518_v62  ;;  %790 = vmatpush.msra.mxu2 %v767_v39  ;;  %v903_v13 = vld [vmem:[%s1631_s7 + $0x18] sm:$0xff]  ;;  %v900_v60 = vld [vmem:[%s1631_s7] sm:$0xff] }
 0x428   :  { %1118 = vmatmul.msk.f32.vlgmr.msrb.gmra.mxu3 %vm104_vm1, %v678_v1  ;;  %926 = vmatpush.msrb.mxu0 %v903_v13 }
 0x429   :  { %1113 = vmatmul.msk.f32.vlgmr.msra.gmra.mxu1 %vm104_vm1, %v521_v0  ;;  %791 = vmatpush.msra.mxu2 %v766_v15 }
 0x42a   :  { %927 = vmatpush.msrb.mxu0 %v902_v56 }
 0x42b   :  { %792 = vmatpush.msra.mxu2 %v765_v10 }
 0x42c   :  { %928 = vmatpush.msrb.mxu0 %v901_v59 }
 0x42d   :  { %793 = vmatpush.msra.mxu2 %v764_v16  ;;  %v946_v16 = vld [vmem:[%s1633_s9 + $0x38] sm:$0xff] }
 0x42e   :  { %929 = vmatpush.msrb.mxu0 %v900_v60  ;;  %966 = vmatpush.msra.mxu3 %v946_v16  ;;  %v940_v60 = vld [vmem:[%s1633_s9 + $0x8] sm:$0xff] }
 0x42f   :  { %v413_v12 = vpop.f32.mrf.mxu1 }
 0x431   :  { %1119 = vmatmul.msk.f32.vlgmr.msrb.gmra.mxu1 %vm104_vm1, %v679_v9  ;;  %v255_v11 = vpop.f32.mrf.mxu3 }
 0x49b   :  { %v387_v6 = vpop.f32.mrf.mxu3 }
 0x49c   :  { %734 = vrot.lane.b32.xlu2 %v387_v6, %s1256_s14 }
 0x4a3   :  { %v545_v36 = vpop.f32.mrf.mxu3 }
 0x4a4   :  { %742 = vrot.lane.b32.xlu0 %v545_v36, %s1268_s18 }
 0x4a6   :  { %v571_v30 = vpop.f32.mrf.mxu1 }
 0x4a7   :  { %744 = vrot.lane.b32.xlu1 %v571_v30, %s1268_s18 }
 0x4ab   :  { %v703_v14 = vpop.f32.mrf.mxu3 }
 0x4ac   :  { %736 = vrot.lane.b32.xlu0 %v413_v12, %s1256_s14  ;;  %750 = vrot.lane.b32.xlu2 %v703_v14, %s1269_s0 }
 0x4ae   :  { %v729_v8 = vpop.f32.mrf.mxu1 }
 0x4b4   :  { %752 = vrot.lane.b32.xlu2 %v729_v8, %s1269_s0 }
 0x4f6   :  { %v735_v17 = vpop.permute.xlu2 %734 }
 0x4f7   :  { %v756_v18 = vsel %vm104_vm1, %v1422_v52, %v735_v17  ;;  %v945_v17 = vld [vmem:[%s1633_s9 + $0x30] sm:$0xff] }
 0x4f8   :  { %967 = vmatpush.msra.mxu3 %v945_v17 }
 0x506   :  { %v751_v19 = vpop.permute.xlu2 %750 }
 0x50e   :  { %v753_v27 = vpop.permute.xlu2 %752 }
 0x516   :  { %v743_v20 = vpop.permute.xlu0 %742 }
 0x517   :  { %v759_v22 = vsel %vm758_vm6, %v756_v18, %v743_v20  ;;  %v944_v20 = vld [vmem:[%s1633_s9 + $0x28] sm:$0xff] }
 0x518   :  { %v762_v23 = vsel %vm761_vm7, %v759_v22, %v751_v19  ;;  %968 = vmatpush.msra.mxu3 %v944_v20 }
 0x519   :  { %1120 = vmatmul.msk.f32.vlgmr.msra.gmra.mxu2 %vm71_vm0, %v762_v23  ;;  %v745_v25 = vpop.permute.xlu1 %744 }
 0x51e   :  { %v737_v24 = vpop.permute.xlu0 %736 }
 0x51f   :  { %v757_v26 = vsel %vm104_vm1, %v255_v11, %v737_v24  ;;  %vm814_vm1 = vweird.f32 %v1185_v40 }
 0x520   :  { %v760_v28 = vsel %vm758_vm6, %v757_v26, %v745_v25  ;;  %v1523_v21 = vsel %vm814_vm1, %v1185_v40, %v813_v44  ;;  %v943_v25 = vld [vmem:[%s1633_s9 + $0x20] sm:$0xff]  ;;  %vm951_vm6 = vcmask 523264  }
 0x521   :  { %v763_v29 = vsel %vm761_vm7, %v760_v28, %v753_v27  ;;  %v942_v28 = vld [vmem:[%s1633_s9 + $0x18] sm:$0xff]  ;;  %969 = vmatpush.msra.mxu3 %v943_v25 }
 0x522   :  { %1121 = vmatmul.msk.f32.gmra.mxu2 %vm71_vm0, %v763_v29 }
 0x523   :  { %970 = vmatpush.msra.mxu3 %v942_v28 }
 0x59c   :  { %v795_v52 = vpop.f32.mrf.mxu2 }
 0x59d   :  { %v796_v32 = vadd.f32 %v1145_v31, %v795_v52 }
 0x59f   :  { %v803_v33 = vsel %vm71_vm0, %v796_v32, 0.0 }
 0x5a0   :  { %804 = vadd.xlane.f32.xlu0 %v803_v33 }
 0x5a5   :  { %v798_v34 = vpop.f32.mrf.mxu2 }
 0x5a6   :  { %v799_v35 = vadd.f32 %v1145_v31, %v798_v34 }
 0x5a8   :  { %v806_v37 = vsel %vm71_vm0, %v799_v35, 0.0 }
 0x5a9   :  { %807 = vadd.xlane.f32.xlu2 %v806_v37 }
 0x613   :  { %v805_v45 = vpop.xlane.xlu0 %804 }
 0x614   :  { %v816_v46 = vmul.f32 %v1523_v21, %v805_v45 }
 0x616   :  { %v1526_v47 = vsub.f32 %v796_v32, %v816_v46 }
 0x618   :  { %v820_v48 = vmul.f32 %v1526_v47, %v1526_v47 }
 0x61a   :  { %v822_v49 = vsel %vm71_vm0, %v820_v48, 0.0 }
 0x61b   :  { %823 = vadd.xlane.f32.xlu1 %v822_v49 }
 0x61c   :  { %v808_v50 = vpop.xlane.xlu2 %807 }
 0x61d   :  { %v817_v51 = vmul.f32 %v1523_v21, %v808_v50 }
 0x61f   :  { %v1532_v53 = vsub.f32 %v799_v35, %v817_v51 }
 0x621   :  { %v821_v54 = vmul.f32 %v1532_v53, %v1532_v53 }
 0x623   :  { %v825_v55 = vsel %vm71_vm0, %v821_v54, 0.0 }
 0x624   :  { %826 = vadd.xlane.f32.xlu0 %v825_v55 }
 0x68e   :  { %v824_v57 = vpop.xlane.xlu1 %823 }
 0x68f   :  { %v828_v58 = vmul.f32 0.032258064, %v824_v57 }
 0x691   :  { %1186 = vrsqrt.f32 %v828_v58  ;;  %vm837_vm8 = vcmp.eq.f32.partialorder %v828_v58, inf  ;;  %v840_v12 = vand.u32 2147483648, %v828_v58  ;;  %vm839_vm9 = vcmp.eq.f32.partialorder %v828_v58, 0.0 }
 0x697   :  { %v1187_v61 = vpop.eup %1186  ;;  %v827_v62 = vpop.xlane.xlu0 %826 }
 0x698   :  { %v831_v63 = vmul.f32 %v1187_v61, %v828_v58  ;;  %v829_v0 = vmul.f32 0.032258064, %v827_v62 }
 0x69a   :  { %v832_v1 = vmul.f32 %v1187_v61, %v831_v63  ;;  %1188 = vrsqrt.f32 %v829_v0  ;;  %vm849_vm10 = vcmp.eq.f32.partialorder %v829_v0, inf  ;;  %v852_v19 = vand.u32 2147483648, %v829_v0 }
 0x69b   :  { %vm851_vm11 = vcmp.eq.f32.partialorder %v829_v0, 0.0 }
 0x69c   :  { %v833_v2 = vmul.f32 0.5, %v832_v1 }
 0x69e   :  { %v834_v3 = vsub.f32 1.5, %v833_v2 }
 0x6a0   :  { %v1189_v7 = vpop.eup %1188  ;;  %v835_v9 = vmul.f32 %v1187_v61, %v834_v3  ;;  %v1149_v3 = vld [vmem:[%s1634_s10] ss:$0 sm:$0xff] }
 0x6a1   :  { %v843_v11 = vmul.f32 %v1189_v7, %v829_v0 }
 0x6a2   :  { %v836_v6 = vmul.f32 %v835_v9, %v828_v58 }
 0x6a3   :  { %v844_v36 = vmul.f32 %v1189_v7, %v843_v11 }
 0x6a4   :  { %v838_v30 = vsel %vm837_vm8, %v828_v58, %v836_v6 }
 0x6a5   :  { %v841_v14 = vsel %vm839_vm9, %v840_v12, %v838_v30  ;;  %v845_v8 = vmul.f32 0.5, %v844_v36 }
 0x6a6   :  { %v854_v39 = vadd.f32 1e-06, %v841_v14 }
 0x6a7   :  { %v846_v15 = vsub.f32 1.5, %v845_v8 }
 0x6a8   :  { %1190 = vrcp.f32 %v854_v39  ;;  %v867_v31 = vand.u32 2147483648, %v854_v39  ;;  %v865_v32 = vand.u32 2147483647, %v854_v39  ;;  %vm861_vm13 = vweird.f32 %v854_v39 }
 0x6a9   :  { %v847_v10 = vmul.f32 %v1189_v7, %v846_v15 }
 0x6aa   :  { %v868_v34 = vor.u32 1.1754944e-38, %v867_v31  ;;  %vm866_vm15 = vcmp.eq.f32.partialorder %v865_v32, 8.507059e+37 }
 0x6ab   :  { %v848_v18 = vmul.f32 %v847_v10, %v829_v0 }
 0x6ad   :  { %v850_v22 = vsel %vm849_vm10, %v829_v0, %v848_v18 }
 0x6ae   :  { %v1191_v23 = vpop.eup %1190  ;;  %v853_v24 = vsel %vm851_vm11, %v852_v19, %v850_v22 }
 0x6af   :  { %v857_v26 = vmul.f32 %v1191_v23, %v854_v39  ;;  %v855_v27 = vadd.f32 1e-06, %v853_v24  ;;  %vm862_vm12 = vweird.f32 %v1191_v23 }
 0x6b0   :  { %vm863_vm14 = vmor %vm861_vm13, %vm862_vm12 }
 0x6b1   :  { %v858_v29 = vsub.f32 1.0, %v857_v26  ;;  %1192 = vrcp.f32 %v855_v27  ;;  %v882_v46 = vand.u32 2147483648, %v855_v27  ;;  %v880_v49 = vand.u32 2147483647, %v855_v27 }
 0x6b2   :  { %vm876_vm3 = vweird.f32 %v855_v27 }
 0x6b3   :  { %v859_v52 = vmul.f32 %v1191_v23, %v858_v29  ;;  %v883_v55 = vor.u32 1.1754944e-38, %v882_v46  ;;  %vm881_vm5 = vcmp.eq.f32.partialorder %v880_v49, 8.507059e+37 }
 0x6b5   :  { %v860_v33 = vadd.f32 %v1191_v23, %v859_v52 }
 0x6b7   :  { %v1193_v35 = vpop.eup %1192  ;;  %v864_v37 = vsel %vm863_vm14, %v1191_v23, %v860_v33 }
 0x6b8   :  { %v869_v40 = vsel %vm866_vm15, %v868_v34, %v864_v37  ;;  %v872_v41 = vmul.f32 %v1193_v35, %v855_v27  ;;  %vm877_vm2 = vweird.f32 %v1193_v35 }
 0x6b9   :  { %v886_v42 = vmul.f32 %v869_v40, %v1526_v47  ;;  %vm878_vm4 = vmor %vm876_vm3, %vm877_vm2 }
 0x6ba   :  { %v873_v44 = vsub.f32 1.0, %v872_v41 }
 0x6bb   :  { %v891_v45 = vmul.f32 %v1146_v38, %v886_v42 }
 0x6bc   :  { %v874_v48 = vmul.f32 %v1193_v35, %v873_v44 }
 0x6bd   :  { %v896_v50 = vadd.f32 %v1147_v43, %v891_v45 }
 0x6be   :  { %v875_v51 = vadd.f32 %v1193_v35, %v874_v48 }
 0x6bf   :  { %v1572_v54 = vadd.f32 %v896_v50, %v1360_v4  ;;  %v941_v4 = vld [vmem:[%s1633_s9 + $0x10] sm:$0xff] }
 0x6c0   :  { %v879_v13 = vsel %vm878_vm4, %v1193_v35, %v875_v51  ;;  %971 = vmatpush.msra.mxu3 %v941_v4 }
 0x6c1   :  { %1122 = vmatmul.msk.f32.vlgmr.msrb.gmra.mxu0 %vm71_vm0, %v1572_v54  ;;  %v884_v47 = vsel %vm881_vm5, %v883_v55, %v879_v13 }
 0x6c2   :  { %v887_v56 = vmul.f32 %v884_v47, %v1532_v53  ;;  %972 = vmatpush.msra.mxu3 %v940_v60  ;;  %v939_v53 = vld [vmem:[%s1633_s9] sm:$0xff] }
 0x6c3   :  { %v1150_v60 = vld [vmem:[%s1635_s11] ss:$0 sm:$0xff]  ;;  %s1271_s11 = smov [#allocation5]  }
 0x6c4   :  { %v892_v57 = vmul.f32 %v1146_v38, %v887_v56  ;;  %973 = vmatpush.msra.mxu3 %v939_v53 }
 0x6c6   :  { %v897_v58 = vadd.f32 %v1147_v43, %v892_v57 }
 0x6c8   :  { %v1578_v59 = vadd.f32 %v897_v58, %v1364_v5  ;;  %v1148_v5 = vld [vmem:[%s1632_s8] ss:$0 sm:$0xff] }
 0x6ca   :  { %1123 = vmatmul.msk.f32.gmra.mxu0 %vm71_vm0, %v1578_v59 }
 0x73e   :  { %v931_v61 = vpop.f32.mrf.mxu0 }
 0x73f   :  { %v932_v62 = vadd.f32 %v1148_v5, %v931_v61 }
 0x741   :  { %v937_v63 = vmax.f32 %v932_v62, 0.0  ;;  %v1151_v62 = vld [vmem:[%s1636_s12] ss:$0 sm:$0xff]  ;;  %s1079_s12 = sshll.u32 %s1271_s11, 4  ;;  %s1080_s12 = int_to_ptr.vmem [resolvable:$true] %s1079_s12 }
 0x743   :  { %1124 = vmatmul.msk.f32.vlgmr.msra.gmra.mxu3 %vm951_vm6, %v937_v63 }
 0x747   :  { %v934_v0 = vpop.f32.mrf.mxu0 }
 0x748   :  { %v935_v1 = vadd.f32 %v1148_v5, %v934_v0 }
 0x74a   :  { %v938_v2 = vmax.f32 %v935_v1, 0.0 }
 0x74c   :  { %1125 = vmatmul.msk.f32.gmra.mxu3 %vm951_vm6, %v938_v2 }
 0x7c6   :  { %v975_v7 = vpop.f32.mrf.mxu3 }
 0x7c7   :  { %v976_v9 = vadd.f32 %v1149_v3, %v975_v7 }
 0x7c9   :  { %v983_v11 = vsel %vm71_vm0, %v976_v9, 0.0 }
 0x7ca   :  { %984 = vadd.xlane.f32.xlu2 %v983_v11 }
 0x7cf   :  { %v978_v6 = vpop.f32.mrf.mxu3 }
 0x7d0   :  { %v979_v12 = vadd.f32 %v1149_v3, %v978_v6 }
 0x7d2   :  { %v986_v36 = vsel %vm71_vm0, %v979_v12, 0.0 }
 0x7d3   :  { %987 = vadd.xlane.f32.xlu0 %v986_v36 }
 0x83d   :  { %v985_v30 = vpop.xlane.xlu2 %984 }
 0x83e   :  { %v989_v14 = vmul.f32 %v985_v30, %v1523_v21 }
 0x840   :  { %v991_v8 = vsub.f32 %v976_v9, %v989_v14 }
 0x842   :  { %v993_v39 = vmul.f32 %v991_v8, %v991_v8 }
 0x844   :  { %v995_v15 = vsel %vm71_vm0, %v993_v39, 0.0 }
 0x845   :  { %996 = vadd.xlane.f32.xlu2 %v995_v15 }
 0x846   :  { %v988_v10 = vpop.xlane.xlu0 %987 }
 0x847   :  { %v990_v16 = vmul.f32 %v988_v10, %v1523_v21 }
 0x849   :  { %v1602_v17 = vsub.f32 %v979_v12, %v990_v16 }
 0x84b   :  { %v994_v18 = vmul.f32 %v1602_v17, %v1602_v17 }
 0x84d   :  { %v998_v19 = vsel %vm71_vm0, %v994_v18, 0.0 }
 0x84e   :  { %999 = vadd.xlane.f32.xlu0 %v998_v19 }
 0x8b8   :  { %v997_v20 = vpop.xlane.xlu2 %996 }
 0x8b9   :  { %v1001_v22 = vmul.f32 0.032258064, %v997_v20 }
 0x8bb   :  { %1194 = vrsqrt.f32 %v1001_v22  ;;  %vm1010_vm7 = vcmp.eq.f32.partialorder %v1001_v22, inf  ;;  %v1013_v33 = vand.u32 2147483648, %v1001_v22  ;;  %vm1012_vm1 = vcmp.eq.f32.partialorder %v1001_v22, 0.0 }
 0x8c1   :  { %v1195_v23 = vpop.eup %1194  ;;  %v1000_v24 = vpop.xlane.xlu0 %999 }
 0x8c2   :  { %v1004_v25 = vmul.f32 %v1195_v23, %v1001_v22  ;;  %v1002_v26 = vmul.f32 0.032258064, %v1000_v24 }
 0x8c4   :  { %v1005_v27 = vmul.f32 %v1195_v23, %v1004_v25  ;;  %1196 = vrsqrt.f32 %v1002_v26  ;;  %vm1022_vm8 = vcmp.eq.f32.partialorder %v1002_v26, inf  ;;  %v1025_v44 = vand.u32 2147483648, %v1002_v26 }
 0x8c5   :  { %vm1024_vm9 = vcmp.eq.f32.partialorder %v1002_v26, 0.0 }
 0x8c6   :  { %v1006_v28 = vmul.f32 0.5, %v1005_v27 }
 0x8c8   :  { %v1007_v29 = vsub.f32 1.5, %v1006_v28 }
 0x8ca   :  { %v1197_v21 = vpop.eup %1196  ;;  %v1008_v31 = vmul.f32 %v1195_v23, %v1007_v29 }
 0x8cb   :  { %v1016_v52 = vmul.f32 %v1197_v21, %v1002_v26 }
 0x8cc   :  { %v1009_v32 = vmul.f32 %v1008_v31, %v1001_v22 }
 0x8cd   :  { %v1017_v34 = vmul.f32 %v1197_v21, %v1016_v52 }
 0x8ce   :  { %v1011_v35 = vsel %vm1010_vm7, %v1001_v22, %v1009_v32 }
 0x8cf   :  { %v1014_v37 = vsel %vm1012_vm1, %v1013_v33, %v1011_v35  ;;  %v1018_v38 = vmul.f32 0.5, %v1017_v34 }
 0x8d0   :  { %v1027_v40 = vadd.f32 1e-06, %v1014_v37 }
 0x8d1   :  { %v1019_v41 = vsub.f32 1.5, %v1018_v38 }
 0x8d2   :  { %1198 = vrcp.f32 %v1027_v40  ;;  %v1040_v55 = vand.u32 2147483648, %v1027_v40  ;;  %v1038_v47 = vand.u32 2147483647, %v1027_v40  ;;  %vm1034_vm11 = vweird.f32 %v1027_v40 }
 0x8d3   :  { %v1020_v42 = vmul.f32 %v1197_v21, %v1019_v41 }
 0x8d4   :  { %v1041_v57 = vor.u32 1.1754944e-38, %v1040_v55  ;;  %vm1039_vm13 = vcmp.eq.f32.partialorder %v1038_v47, 8.507059e+37 }
 0x8d5   :  { %v1021_v43 = vmul.f32 %v1020_v42, %v1002_v26 }
 0x8d7   :  { %v1023_v45 = vsel %vm1022_vm8, %v1002_v26, %v1021_v43 }
 0x8d8   :  { %v1199_v46 = vpop.eup %1198  ;;  %v1026_v48 = vsel %vm1024_vm9, %v1025_v44, %v1023_v45 }
 0x8d9   :  { %v1028_v49 = vadd.f32 1e-06, %v1026_v48  ;;  %v1030_v50 = vmul.f32 %v1199_v46, %v1027_v40  ;;  %vm1035_vm10 = vweird.f32 %v1199_v46 }
 0x8da   :  { %vm1036_vm12 = vmor %vm1034_vm11, %vm1035_vm10 }
 0x8db   :  { %1200 = vrcp.f32 %v1028_v49  ;;  %v1031_v51 = vsub.f32 1.0, %v1030_v50  ;;  %v1055_v0 = vand.u32 2147483648, %v1028_v49  ;;  %v1053_v3 = vand.u32 2147483647, %v1028_v49 }
 0x8dc   :  { %vm1049_vm15 = vweird.f32 %v1028_v49 }
 0x8dd   :  { %v1032_v13 = vmul.f32 %v1199_v46, %v1031_v51  ;;  %v1056_v11 = vor.u32 1.1754944e-38, %v1055_v0  ;;  %vm1054_vm3 = vcmp.eq.f32.partialorder %v1053_v3, 8.507059e+37 }
 0x8df   :  { %v1033_v56 = vadd.f32 %v1199_v46, %v1032_v13 }
 0x8e1   :  { %v1201_v58 = vpop.eup %1200  ;;  %v1037_v4 = vsel %vm1036_vm12, %v1199_v46, %v1033_v56 }
 0x8e2   :  { %v1042_v53 = vsel %vm1039_vm13, %v1041_v57, %v1037_v4  ;;  %v1045_v5 = vmul.f32 %v1201_v58, %v1028_v49  ;;  %vm1050_vm14 = vweird.f32 %v1201_v58 }
 0x8e3   :  { %v1059_v61 = vmul.f32 %v1042_v53, %v991_v8  ;;  %vm1051_vm2 = vmor %vm1049_vm15, %vm1050_vm14 }
 0x8e4   :  { %v1046_v63 = vsub.f32 1.0, %v1045_v5 }
 0x8e5   :  { %v1064_v1 = vmul.f32 %v1150_v60, %v1059_v61 }
 0x8e6   :  { %v1047_v2 = vmul.f32 %v1201_v58, %v1046_v63 }
 0x8e7   :  { %v1069_v7 = vadd.f32 %v1151_v62, %v1064_v1 }
 0x8e8   :  { %v1048_v9 = vadd.f32 %v1201_v58, %v1047_v2 }
 0x8e9   :  { %v1071_v6 = vadd.f32 %v1069_v7, %v1572_v54 }
 0x8ea   :  { %v1052_v12 = vsel %vm1051_vm2, %v1201_v58, %v1048_v9 }
 0x8eb   :  { %v1057_v36 = vsel %vm1054_vm3, %v1056_v11, %v1052_v12  ;;  %1073 = vst.msk [vmem:[#allocation5] sm:$0xff] %vm71_vm0, %v1071_v6 }
 0x8ec   :  { %v1060_v30 = vmul.f32 %v1057_v36, %v1602_v17 }
 0x8ee   :  { %v1065_v14 = vmul.f32 %v1150_v60, %v1060_v30 }
 0x8f0   :  { %v1070_v8 = vadd.f32 %v1151_v62, %v1065_v14 }
 0x8f2   :  { %v1072_v39 = vadd.f32 %v1070_v8, %v1578_v59 }
 0x8f4   :  { %1074 = vst.msk [vmem:[#allocation5 + $0x8] sm:$0xff] %vm71_vm0, %v1072_v39 }
 0x8f5   :  { %1087 = dma.vmem_to_hbm [thread:$0]  %s1080_s12, 256, %s1082_s20, [#allocation4], %s1255_s30, %s1255_s30, %s1256_s14  }
 0x8f6   :  { %1252 = dma.done.wait [#allocation4], 256  }
 0x8f7   :  { %1253 = vsyncadd [#allocation4], 4294967040 }
 0x8f8   :  { %1092 = vsyncpa [#allocation3], 1 }
 0x8f9   :  { %1093 = vsyncpa [#allocation4], 1 }

</bundles_post_ra>
